<compile_context>
chip_gen: v7x
topology: tpu7x:2x2x1
jax: 0.10.0
libtpu: 0.0.40
codegen_flags: <defaults>
</compile_context>

<pallas_src>
import functools

import jax
import jax.numpy as jnp
from jax.experimental import pallas as pl
from jax.experimental.pallas import tpu as pltpu


def _round_up(v, m):
    return ((v + m - 1) // m) * m


def _vmem_capacity_bytes():
    """Physical VMEM per TensorCore (64 MiB on v7x, 128 MiB on v5e/v6e)."""
    try:
        info = pltpu.get_tpu_info()
        cap = getattr(info, "vmem_capacity_bytes", None)
        if cap:
            return int(cap)
    except Exception:
        pass
    return 128 << 20


def _clamp_vmem(need_bytes, cap_bytes):
    return int(min(max(need_bytes, 32 << 20), int(0.9 * cap_bytes)))


# ----------------------------------------------------------------------------
# Fused path: one program per batch element, whole (C, T) slab in VMEM.
# ----------------------------------------------------------------------------
def _gln_fused_kernel(x_ref, gamma_ref, beta_ref, o_ref, *, eps, inv_n):
    # x_ref / o_ref: (C, T) slab for the current batch element (batch squeezed).
    x = x_ref[...]
    xf = x.astype(jnp.float32)

    # Fused single-pass global statistics, accumulated in f32 (square in f32).
    s1 = jnp.sum(xf)
    s2 = jnp.sum(xf * xf)
    mean = s1 * inv_n
    var = jnp.maximum(s2 * inv_n - mean * mean, 0.0)
    inv_std = jax.lax.rsqrt(var + jnp.float32(eps))

    # Fold the affine into per-channel scale/shift (computed once per slab).
    gamma = gamma_ref[...].astype(jnp.float32)          # (C, 1)
    beta = beta_ref[...].astype(jnp.float32)            # (C, 1)
    scale = gamma * inv_std
    shift = beta - mean * scale

    if x.dtype == jnp.bfloat16:
        # bf16 VALU path (v6e/v7x): halves vreg traffic for the elementwise pass.
        o_ref[...] = (x * scale.astype(x.dtype) + shift.astype(x.dtype)).astype(o_ref.dtype)
    else:
        o_ref[...] = (xf * scale + shift).astype(o_ref.dtype)


def _gln_fused(x, gamma, beta, eps, *, vmem_cap):
    N, C, T = x.shape
    itemsize = jnp.dtype(x.dtype).itemsize
    slab_bytes = C * T * itemsize

    # in + out slabs, double-buffered, plus tiny params and a small margin.
    need = 4 * slab_bytes + 8 * C * itemsize + (2 << 20)
    vmem_limit = _clamp_vmem(need, vmem_cap)

    x_spec = pl.BlockSpec((pl.Squeezed(), C, T), lambda n: (n, 0, 0))
    o_spec = pl.BlockSpec((pl.Squeezed(), C, T), lambda n: (n, 0, 0))
    p_spec = pl.BlockSpec((C, 1), lambda n: (0, 0))

    kernel = functools.partial(
        _gln_fused_kernel, eps=float(eps), inv_n=1.0 / float(C * T))

    cost = pl.CostEstimate(
        flops=5 * N * C * T,
        transcendentals=N,
        bytes_accessed=2 * N * C * T * itemsize + 2 * C * itemsize,
    )

    return pl.pallas_call(
        kernel,
        out_shape=jax.ShapeDtypeStruct((N, C, T), x.dtype),
        grid_spec=pltpu.PrefetchScalarGridSpec(
            num_scalar_prefetch=0,
            grid=(N,),
            in_specs=[x_spec, p_spec, p_spec],
            out_specs=o_spec,
        ),
        compiler_params=pltpu.CompilerParams(
            dimension_semantics=("parallel",),
            vmem_limit_bytes=vmem_limit,
        ),
        cost_estimate=cost,
    )(x, gamma, beta)


# ----------------------------------------------------------------------------
# Tiled two-pass path (large C*T slabs): pass 1 accumulates s1/s2 per batch,
# pass 2 normalizes tile-by-tile.  Both passes fully double-buffered.
# ----------------------------------------------------------------------------
def _gln_stats_kernel(x_ref, s1_ref, s2_ref, *, tile_t, t_total, mask_tail):
    t = pl.program_id(1)

    @pl.when(t == 0)
    def _init():
        s1_ref[...] = jnp.zeros_like(s1_ref)
        s2_ref[...] = jnp.zeros_like(s2_ref)

    x = x_ref[...].astype(jnp.float32)                   # (C, tile_t)
    if mask_tail:
        lane = jax.lax.broadcasted_iota(jnp.int32, x.shape, 1)
        valid = (t * tile_t + lane) < t_total
        x = jnp.where(valid, x, 0.0)

    s1_ref[...] += jnp.sum(x)
    s2_ref[...] += jnp.sum(x * x)


def _gln_norm_kernel(x_ref, scale_ref, shift_ref, o_ref):
    x = x_ref[...]                                       # (C, tile_t)
    if x.dtype == jnp.bfloat16:
        o_ref[...] = (x * scale_ref[...].astype(x.dtype)
                      + shift_ref[...].astype(x.dtype)).astype(o_ref.dtype)
    else:
        o_ref[...] = (x.astype(jnp.float32) * scale_ref[...]
                      + shift_ref[...]).astype(o_ref.dtype)


def _gln_tiled(x, gamma, beta, eps, *, vmem_cap, tile_t=None):
    N, C, T = x.shape
    itemsize = jnp.dtype(x.dtype).itemsize

    if tile_t is None:
        tile_t = 2048
        # Shrink the T tile until x+out double-buffered fits comfortably.
        while tile_t > 128 and 4 * C * tile_t * itemsize > int(0.6 * vmem_cap):
            tile_t //= 2
    tile_t = _round_up(int(tile_t), 128)
    tile_t = min(tile_t, _round_up(T, 128))
    nT = (T + tile_t - 1) // tile_t
    mask_tail = (T % tile_t) != 0
    inv_n = 1.0 / float(C * T)
    tile_bytes = C * tile_t * itemsize

    # ---- pass 1: per-batch sum / sum-of-squares -----------------------------
    stats_kernel = functools.partial(
        _gln_stats_kernel, tile_t=tile_t, t_total=T, mask_tail=mask_tail)

    stat_spec = pl.BlockSpec((pl.Squeezed(), 1, 1), lambda n, t: (n, 0, 0))
    stats_cost = pl.CostEstimate(
        flops=3 * N * C * T,
        transcendentals=0,
        bytes_accessed=N * C * T * itemsize + 8 * N,
    )
    s1, s2 = pl.pallas_call(
        stats_kernel,
        out_shape=(jax.ShapeDtypeStruct((N, 1, 1), jnp.float32),
                   jax.ShapeDtypeStruct((N, 1, 1), jnp.float32)),
        grid_spec=pltpu.PrefetchScalarGridSpec(
            num_scalar_prefetch=0,
            grid=(N, nT),
            in_specs=[pl.BlockSpec((pl.Squeezed(), C, tile_t),
                                   lambda n, t: (n, 0, t))],
            out_specs=[stat_spec, stat_spec],
        ),
        compiler_params=pltpu.CompilerParams(
            dimension_semantics=("parallel", "arbitrary"),
            vmem_limit_bytes=_clamp_vmem(2 * tile_bytes + (2 << 20), vmem_cap),
        ),
        cost_estimate=stats_cost,
    )(x)

    # Tiny per-batch scalar math + (N, C, 1) scale/shift folding in plain JAX.
    s1 = s1.reshape(N)
    s2 = s2.reshape(N)
    mean = s1 * inv_n
    var = jnp.maximum(s2 * inv_n - mean * mean, 0.0)
    inv_std = jax.lax.rsqrt(var + jnp.float32(eps))
    gamma_f = gamma.astype(jnp.float32)[None]            # (1, C, 1)
    beta_f = beta.astype(jnp.float32)[None]              # (1, C, 1)
    scale = gamma_f * inv_std[:, None, None]             # (N, C, 1) f32
    shift = beta_f - mean[:, None, None] * scale         # (N, C, 1) f32

    # ---- pass 2: tile-by-tile normalize, both grid axes parallel ------------
    norm_cost = pl.CostEstimate(
        flops=2 * N * C * T,
        transcendentals=0,
        bytes_accessed=2 * N * C * T * itemsize + 8 * N * C,
    )
    out = pl.pallas_call(
        _gln_norm_kernel,
        out_shape=jax.ShapeDtypeStruct((N, C, T), x.dtype),
        grid_spec=pltpu.PrefetchScalarGridSpec(
            num_scalar_prefetch=0,
            grid=(N, nT),
            in_specs=[pl.BlockSpec((pl.Squeezed(), C, tile_t),
                                   lambda n, t: (n, 0, t)),
                      pl.BlockSpec((pl.Squeezed(), C, 1),
                                   lambda n, t: (n, 0, 0)),
                      pl.BlockSpec((pl.Squeezed(), C, 1),
                                   lambda n, t: (n, 0, 0))],
            out_specs=pl.BlockSpec((pl.Squeezed(), C, tile_t),
                                   lambda n, t: (n, 0, t)),
        ),
        compiler_params=pltpu.CompilerParams(
            dimension_semantics=("parallel", "parallel"),
            vmem_limit_bytes=_clamp_vmem(4 * tile_bytes + 16 * C * N + (2 << 20),
                                         vmem_cap),
        ),
        cost_estimate=norm_cost,
    )(x, scale, shift)
    return out


# ----------------------------------------------------------------------------
# Public wrapper
# ----------------------------------------------------------------------------
def global_channel_layer_norm(x, gamma=None, beta=None, eps=1e-5, *,
                              tile_t=None, force_tiled=False):
    """Global channel layer norm (gLN).

    x: (N, C, T);  gamma, beta: (C, 1)  (None -> no elementwise affine).
    """
    if x.ndim != 3:
        raise RuntimeError("GlobalChannelLayerNorm accepts 3D tensor as input")
    N, C, T = x.shape

    if gamma is None:
        gamma = jnp.ones((C, 1), dtype=x.dtype)
    if beta is None:
        beta = jnp.zeros((C, 1), dtype=x.dtype)

    itemsize = jnp.dtype(x.dtype).itemsize
    vmem_cap = _vmem_capacity_bytes()
    slab_bytes = C * T * itemsize
    fused_need = 4 * slab_bytes + 8 * C * itemsize + (2 << 20)

    if force_tiled or fused_need > int(0.72 * vmem_cap):
        return _gln_tiled(x, gamma, beta, eps, vmem_cap=vmem_cap, tile_t=tile_t)
    return _gln_fused(x, gamma, beta, eps, vmem_cap=vmem_cap)


def global_channel_layer_norm_ref(x, gamma, beta, eps=1e-5):
    """Pure-JAX reference mirroring the PyTorch forward."""
    mean = jnp.mean(x, axis=(1, 2), keepdims=True)
    var = jnp.mean((x - mean) ** 2, axis=(1, 2), keepdims=True)
    return gamma[None] * (x - mean) / jnp.sqrt(var + eps) + beta[None]


if __name__ == "__main__":
    key = jax.random.PRNGKey(0)
    kx, kg, kb, kx2 = jax.random.split(key, 4)

    # Small shape consistent with the N x C x T input contract.
    N, C, T = 2, 4, 16
    x = jax.random.normal(kx, (N, C, T), dtype=jnp.float32)

    # Default module init: gamma = ones(C, 1), beta = zeros(C, 1).
    gamma0 = jnp.ones((C, 1), dtype=jnp.float32)
    beta0 = jnp.zeros((C, 1), dtype=jnp.float32)
    out0 = jax.block_until_ready(global_channel_layer_norm(x, gamma0, beta0, eps=1e-5))
    ref0 = global_channel_layer_norm_ref(x, gamma0, beta0, eps=1e-5)
    assert out0.shape == (N, C, T)
    assert jnp.allclose(out0, ref0, atol=1e-5, rtol=1e-5)

    # Non-trivial affine to exercise the folded scale/shift path.
    gamma1 = jax.random.normal(kg, (C, 1), dtype=jnp.float32)
    beta1 = jax.random.normal(kb, (C, 1), dtype=jnp.float32)
    out1 = jax.block_until_ready(global_channel_layer_norm(x, gamma1, beta1, eps=1e-5))
    ref1 = global_channel_layer_norm_ref(x, gamma1, beta1, eps=1e-5)
    assert jnp.allclose(out1, ref1, atol=1e-5, rtol=1e-5)

    # Unaligned C/T (no padding path anymore) — fused kernel with full-extent
    # blocks, and the tiled two-pass path forced with a 128-wide T tile so the
    # masked tail and the multi-tile accumulation are exercised on hardware.
    N2, C2, T2 = 2, 6, 300
    x2 = jax.random.normal(kx2, (N2, C2, T2), dtype=jnp.float32)
    gamma2 = jnp.ones((C2, 1), dtype=jnp.float32)
    beta2 = jnp.zeros((C2, 1), dtype=jnp.float32)
    ref2 = global_channel_layer_norm_ref(x2, gamma2, beta2, eps=1e-5)

    out2_fused = jax.block_until_ready(
        global_channel_layer_norm(x2, gamma2, beta2, eps=1e-5))
    assert jnp.allclose(out2_fused, ref2, atol=1e-4, rtol=1e-4)

    out2_tiled = jax.block_until_ready(
        global_channel_layer_norm(x2, gamma2, beta2, eps=1e-5,
                                  force_tiled=True, tile_t=128))
    assert jnp.allclose(out2_tiled, ref2, atol=1e-4, rtol=1e-4)

    print("KERNEL_OK")
</pallas_src>

<mosaic_0001>
module attributes {stable_mosaic.version = 11 : i64} {
  func.func @_gln_fused_kernel(%arg0: i32, %arg1: memref<1x4x16xf32, #tpu.memory_space<vmem>>, %arg2: memref<4x1xf32, #tpu.memory_space<vmem>>, %arg3: memref<4x1xf32, #tpu.memory_space<vmem>>, %arg4: memref<1x4x16xf32, #tpu.memory_space<vmem>>) attributes {dimension_semantics = [#tpu.dimension_semantics<parallel>], iteration_bounds = array<i64: 2>, scalar_prefetch = 0 : i64, scratch_operands = 0 : i64, tpu.core_type = #tpu.core_type<tc>, window_params = [{transform_indices = @transform_0, window_bounds = array<i64: 1, 4, 16>}, {pipeline_mode = #tpu.pipeline_mode<synchronous>, transform_indices = @transform_1, window_bounds = array<i64: 4, 1>}, {pipeline_mode = #tpu.pipeline_mode<synchronous>, transform_indices = @transform_2, window_bounds = array<i64: 4, 1>}, {transform_indices = @transform_3, window_bounds = array<i64: 1, 4, 16>}]} {
    %c0 = arith.constant 0 : index
    %c0_0 = arith.constant 0 : index
    %c0_1 = arith.constant 0 : index
    %0 = vector.load %arg1[%c0, %c0_0, %c0_1] : memref<1x4x16xf32, #tpu.memory_space<vmem>>, vector<1x4x16xf32>
    %1 = vector.shape_cast %0 : vector<1x4x16xf32> to vector<4x16xf32>
    %2 = vector.shape_cast %1 : vector<4x16xf32> to vector<1x4x16xf32>
    %cst = arith.constant dense<0.000000e+00> : vector<1xf32>
    %3 = vector.multi_reduction <add>, %2, %cst [1, 2] : vector<1x4x16xf32> to vector<1xf32>
    %4 = vector.shape_cast %3 : vector<1xf32> to vector<1x1x1xf32>
    %5 = vector.extract %4[0, 0, 0] : f32 from vector<1x1x1xf32>
    %6 = arith.mulf %1, %1 : vector<4x16xf32>
    %7 = vector.shape_cast %6 : vector<4x16xf32> to vector<1x4x16xf32>
    %cst_2 = arith.constant dense<0.000000e+00> : vector<1xf32>
    %8 = vector.multi_reduction <add>, %7, %cst_2 [1, 2] : vector<1x4x16xf32> to vector<1xf32>
    %9 = vector.shape_cast %8 : vector<1xf32> to vector<1x1x1xf32>
    %10 = vector.extract %9[0, 0, 0] : f32 from vector<1x1x1xf32>
    %cst_3 = arith.constant 1.562500e-02 : f32
    %11 = arith.mulf %5, %cst_3 : f32
    %cst_4 = arith.constant 1.562500e-02 : f32
    %12 = arith.mulf %10, %cst_4 : f32
    %13 = arith.mulf %11, %11 : f32
    %14 = arith.subf %12, %13 : f32
    %cst_5 = arith.constant 0.000000e+00 : f32
    %15 = arith.maximumf %14, %cst_5 : f32
    %cst_6 = arith.constant 9.99999974E-6 : f32
    %16 = arith.addf %15, %cst_6 : f32
    %17 = math.rsqrt %16 : f32
    %c0_7 = arith.constant 0 : index
    %c0_8 = arith.constant 0 : index
    %18 = vector.load %arg2[%c0_7, %c0_8] : memref<4x1xf32, #tpu.memory_space<vmem>>, vector<4x1xf32>
    %c0_9 = arith.constant 0 : index
    %c0_10 = arith.constant 0 : index
    %19 = vector.load %arg3[%c0_9, %c0_10] : memref<4x1xf32, #tpu.memory_space<vmem>>, vector<4x1xf32>
    %20 = vector.broadcast %17 : f32 to vector<4x1xf32>
    %21 = arith.mulf %18, %20 : vector<4x1xf32>
    %22 = vector.broadcast %11 : f32 to vector<4x1xf32>
    %23 = arith.mulf %22, %21 : vector<4x1xf32>
    %24 = arith.subf %19, %23 : vector<4x1xf32>
    %25 = vector.broadcast %21 : vector<4x1xf32> to vector<4x16xf32>
    %26 = arith.mulf %1, %25 : vector<4x16xf32>
    %27 = vector.broadcast %24 : vector<4x1xf32> to vector<4x16xf32>
    %28 = arith.addf %26, %27 : vector<4x16xf32>
    %c0_11 = arith.constant 0 : index
    %c0_12 = arith.constant 0 : index
    %c0_13 = arith.constant 0 : index
    %29 = vector.load %arg4[%c0_11, %c0_12, %c0_13] : memref<1x4x16xf32, #tpu.memory_space<vmem>>, vector<1x4x16xf32>
    %30 = vector.shape_cast %29 : vector<1x4x16xf32> to vector<4x16xf32>
    %31 = vector.shape_cast %28 : vector<4x16xf32> to vector<1x4x16xf32>
    tpu.vector_store %arg4[%c0_11, %c0_12, %c0_13], %31 {strides = array<i32>} : memref<1x4x16xf32, #tpu.memory_space<vmem>>, vector<1x4x16xf32>,
    return
  }
  func.func @transform_0(%arg0: i32) -> (i32, i32, i32) {
    %c0_i32 = arith.constant 0 : i32
    %c0_i32_0 = arith.constant 0 : i32
    %c0_i32_1 = arith.constant 0 : i32
    return %arg0, %c0_i32, %c0_i32_0 : i32, i32, i32
  }
  func.func @transform_1(%arg0: i32) -> (i32, i32) {
    %c0_i32 = arith.constant 0 : i32
    %c0_i32_0 = arith.constant 0 : i32
    %c0_i32_1 = arith.constant 0 : i32
    return %c0_i32, %c0_i32_0 : i32, i32
  }
  func.func @transform_2(%arg0: i32) -> (i32, i32) {
    %c0_i32 = arith.constant 0 : i32
    %c0_i32_0 = arith.constant 0 : i32
    %c0_i32_1 = arith.constant 0 : i32
    return %c0_i32, %c0_i32_0 : i32, i32
  }
  func.func @transform_3(%arg0: i32) -> (i32, i32, i32) {
    %c0_i32 = arith.constant 0 : i32
    %c0_i32_0 = arith.constant 0 : i32
    %c0_i32_1 = arith.constant 0 : i32
    return %arg0, %c0_i32, %c0_i32_0 : i32, i32, i32
  }
}

</mosaic_0001>

<bundles_post_ra>
// kernel: tpu_custom_call.1
= control target key start
LH: loop header
LB: loop body
LE: loop exit
PB: predicated region body
PF: predicated region fallthrough
CT: control target
= control target key end

     0   :  { %8 = vsyncpa [#allocation3], 0  ;;  %s548_s0 = inlined_call_operand.vmem [shape: f32[2,4,16], index: 0, kind: input, shape index: {}]   ;;  %s549_s1 = inlined_call_operand.vmem [shape: f32[4,1], index: 1, kind: input, shape index: {}]   ;;  %s550_s2 = inlined_call_operand.vmem [shape: f32[4,1], index: 2, kind: input, shape index: {}]   ;;  %s551_s3 = inlined_call_operand.hbm [shape: f32[2,4,16], index: 3, kind: output, shape index: {}]  }
   0x1   :  { %10 = vsyncpa [#allocation3 + $0x1], 0  ;;  %s439_s12 = smov 0   ;;  %s441_s13 = smov 0  }
   0x2   :  { %s443_s14 = smov 0   ;;  %s445_s15 = smov 0  }
   0x3 LB: > { %s460_s16 = sadd.s32 4294967295, %s414_s15   ;;  %s291_s17 = sadd.s32 4294967294, %s414_s15   ;;  %s414_s15 = sphi %s445_s15, %s557_s15   ;;  %s410_s14 = sphi %s443_s14, %s556_s14   ;;  %s406_s13 = sphi %s441_s13, %s555_s13   ;;  %s402_s12 = sphi %s439_s12, %s554_s12  }
   0x4   : > { %s464_s18 = sadd.s32 1, %s414_s15   ;;  %s91_s19 = sadd.s32 1, %s410_s14 }
   0x5   : > { %s88_s20 = ssub.s32 %s414_s15, %s464_s18  ;;  %p101_p0 = scmp.ne.s32.totalorder %s410_s14, %s406_s13 }
   0x6   : > { %p89_p1 = scmp.eq.s32.totalorder %s88_s20, 0  ;;  %p102_p2 = scmp.eq.s32.totalorder %s460_s16, 1 }
   0x7   : > { %p107_p3 = scmp.ne.s32.totalorder %s406_s13, %s402_s12  ;;  %p108_p4 = scmp.eq.s32.totalorder %s291_s17, 1 }
   0x8   : > { %s475_s21 = scalar_select %p89_p1, %s410_s14, %s91_s19  }
   0x9   : > { %p477_p5 = por %p102_p2, %p101_p0  ;;  %p481_p6 = por %p108_p4, %p107_p3 }
   0xa   : > { %p294_p7 = scmp.ge.s32.totalorder %s414_s15, 1  ;;  %p139_p8 = scmp.lt.s32.totalorder %s414_s15, 3 }
   0xc   : > { %p140_p9 = pnand %p294_p7, %p139_p8 }
   0xd   : > { %p162_p10 = scmp.lt.s32.totalorder (!%p140_p9), %s460_s16, 1  ;;  %vm167_vm0 = vcmask (!%p140_p9), 125952   ;;  %v416_v14 = vmov (!%p140_p9), 0   ;;  %s417_s8 = smov (!%p140_p9), 0.0   ;;  %v198_v21 = vld [vmem:[%s549_s1] sm:$0xf] (!%p140_p9) }
   0xe   : > { %143 = sbr.rel (%p140_p9) target bundleno = 455 (0x1c7), region = 32  ;;  %348 = vset.pattern.permute.xlu1 (!%p140_p9), %v416_v14  ;;  %349 = vset.pattern.permute.xlu0 (!%p140_p9), %v416_v14  ;;  %v199_v25 = vld [vmem:[%s550_s2] sm:$0xf] (!%p140_p9)  ;;  %s298_s27 = sshll.u32 (!%p140_p9), %s460_s16, 6 }
  0x15   : > { %s163_s24 = scalar_select %p162_p10, %s460_s16, 1 }
  0x16   : > { %s418_s16 = smov [#allocation2]  }
  0x17   : > { %s296_s25 = sshll.u32 %s163_s24, 2 }
  0x18   : > { %s165_s28 = scalar_lea.vmem %s548_s0, %s296_s25  ;;  %s159_s25 = sand.u32 1, %s406_s13  }
  0x19   : > { %v166_v0 = vld [vmem:[%s165_s28] sm:$0xf]  ;;  %s295_s26 = sshll.u32 %s159_s25, 2 }
  0x1a   : > { %v168_v1 = vsel %vm167_vm0, %v166_v0, 0.0  ;;  %v178_v2 = vmul.f32 %v166_v0, %v166_v0  ;;  %s161_s28 = scalar_lea.vmem [#allocation2], %s295_s26 }
  0x1b   : > { %169 = vadd.xlane.f32.xlu0 %v168_v1 }
  0x1c   : > { %v179_v3 = vsel %vm167_vm0, %v178_v2, 0.0 }
  0x1f   : > { %180 = vadd.xlane.f32.xlu0 %v179_v3 }
  0xa8   : > { %v170_v4 = vpop.xlane.xlu0 %169 }
  0xa9   : > { %v171_v5 = vrot.slane %v170_v4, 4 }
  0xab   : > { %v172_v6 = vadd.f32 %v171_v5, %v170_v4 }
  0xac   : > { %v181_v7 = vpop.xlane.xlu0 %180 }
  0xad   : > { %v173_v8 = vrot.slane %v172_v6, 2  ;;  %v182_v9 = vrot.slane %v181_v7, 4 }
  0xaf   : > { %v183_v10 = vadd.f32 %v182_v9, %v181_v7  ;;  %v174_v11 = vadd.f32 %v173_v8, %v172_v6 }
  0xb1   : > { %v184_v12 = vrot.slane %v183_v10, 2  ;;  %v175_v13 = vrot.slane %v174_v11, 1 }
  0xb3   : > { %v185_v15 = vadd.f32 %v184_v12, %v183_v10  ;;  %v176_v16 = vadd.f32 %v175_v13, %v174_v11 }
  0xb5   : > { %301 = vpush %v176_v16  ;;  %v186_v17 = vrot.slane %v185_v15, 1 }
  0xb7   : > { %v187_v18 = vadd.f32 %v186_v17, %v185_v15 }
  0xb9   : > { %303 = vpush %v187_v18 }
  0xe6   : > { %s302_s29 = spop %301 }
  0xe7   : > { %s189_s30 = smul.f32 0.015625, %s302_s29  ;;  %s232_s29 = sshll.u32 %s161_s28, 4  ;;  %s507_s29 = int_to_ptr.vmem [resolvable:$true] %s232_s29 }
  0xe9   : > { %s191_s4 = smul.f32 %s189_s30, %s189_s30  ;;  %v202_v24 = vstv %s189_s30 }
  0xea   : > { %s304_s5 = spop %303 }
  0xeb   : > { %s190_s6 = smul.f32 0.015625, %s304_s5  ;;  %s505_s5 = scalar_lea.hbm %s551_s3, %s298_s27 }
  0xed   : > { %s192_s7 = ssub.f32 %s190_s6, %s191_s4  ;;  %s219_s6 = scalar_lea.sflag [#allocation3], %s159_s25 }
  0xef   : > { %s193_s9 = smax.f32 %s417_s8, %s192_s7  ;;  %s352_s7 = scalar_lea.vmem %s507_s29, 64 }
  0xf0   : > { %s194_s10 = sadd.f32 1e-05, %s193_s9  ;;  %p353_p11 = scmp.ne.s32.totalorder %s507_s29, %s352_s7 }
  0xf1   : > { %s356_s8 = sshll.u32 %s418_s16, 4  ;;  %s357_s8 = int_to_ptr.vmem [resolvable:$false] %s356_s8 }
  0xf2   : > { %v195_v19 = vstv %s194_s10  ;;  %p354_p12 = pnand %p353_p11, %p477_p5  ;;  %s358_s9 = scalar_lea.vmem %s357_s8, 128 }
  0xf3   : > { %350 = vrsqrt.f32 %v195_v19  ;;  %p359_p0 = scmp.lt.s32.totalorder %s507_s29, %s357_s8  ;;  %p360_p1 = scmp.lt.s32.totalorder %s358_s9, %s352_s7 }
  0xf4   : > { %p355_p13 = pneg %p354_p12 }
  0xf5   : > { %p361_p2 = por %p360_p1, %p359_p0 }
  0xf7   : > { %p362_p3 = pnand %p361_p2, %p355_p13 }
  0xfd   : > { %v351_v20 = vpop.eup %350 }
  0xfe   : > { %305 = vpush %v351_v20 }
 0x12f   : > { %s306_s19 = spop %305 }
 0x130   : > { %v200_v22 = vstv %s306_s19 }
 0x131   : > { %v201_v23 = vmul.f32 %v200_v22, %v198_v21 }
 0x133   : > { %v203_v26 = vmul.f32 %v202_v24, %v201_v23  ;;  %207 = vperm.xlu1 %348, %v201_v23  }
 0x135   : > { %v204_v27 = vsub.f32 %v199_v25, %v203_v26 }
 0x137   : > { %213 = vperm.xlu1 %348, %v204_v27  }
 0x1b2   : > { %v208_v28 = vpop.permute.xlu1 %207 }
 0x1b3   : > { %v210_v29 = vmul.f32 %v208_v28, %v166_v0 }
 0x1b6   : > { %v214_v30 = vpop.permute.xlu1 %213 }
 0x1b7   : > { %v216_v31 = vadd.f32 %v214_v30, %v210_v29 }
 0x1b9   : > { %217 = vst.msk [vmem:[%s161_s28] sm:$0xf] %vm167_vm0, %v216_v31 }
 0x1ba   : > { %365 = shalt.err (!%p362_p3)
}
 0x1bb   : > { %s366_s10 = scalar_lea.hbm %s505_s5, 64  ;;  %s370_s19 = scalar_lea.hbm %s551_s3, 128 }
 0x1bc   : > { %p367_p4 = scmp.ne.s32.totalorder %s505_s5, %s366_s10  ;;  %p371_p9 = scmp.lt.u32.totalorder %s505_s5, %s551_s3 }
 0x1bd   : > { %p372_p10 = scmp.lt.u32.totalorder %s370_s19, %s366_s10  ;;  %p374_p12 = scmp.lt.u32.totalorder %s366_s10, %s505_s5 }
 0x1be   : > { %p368_p7 = pnand %p367_p4, %p477_p5 }
 0x1bf   : > { %p373_p11 = por %p372_p10, %p371_p9 }
 0x1c0   : > { %p369_p8 = pneg %p368_p7 }
 0x1c1   : > { %p375_p13 = por %p374_p12, %p373_p11 }
 0x1c3   : > { %p376_p0 = pnand %p375_p13, %p369_p8 }
 0x1c5   : > { %379 = shalt.err (!%p376_p0)
}
 0x1c6   : > { %307 = dma.vmem_to_hbm [thread:$0]  (%p477_p5), %s507_s29, 64, %s505_s5, %s219_s6  }
 0x1c7 PF: > { %p313_p1 = scmp.ge.s32.totalorder %s414_s15, 2  ;;  %s244_s25 = sand.u32 1, %s402_s12  }
 0x1c8   : > { %s245_s26 = scalar_lea.sflag [#allocation3], %s244_s25 }
 0x1c9   : > { %p310_p2 = pnand %p313_p1, %p481_p6 }
 0x1cb   : > { %397 = dma.done.wait (!%p310_p2), %s245_s26, 64  }
 0x1cc   : > { %399 = vsyncadd (!%p310_p2), %s245_s26, 4294967232  ;;  %p13_p3 = scmp.ge.s32.totalorder %s464_s18, 4   ;;  %s554_s12 = smov %s406_s13 }
 0x1cd   : > { %s555_s13 = smov %s410_s14  ;;  %s556_s14 = smov %s475_s21 }
 0x1ce   : > { %s557_s15 = smov %s464_s18  ;;  %15 = sbr.rel (!%p13_p3) target bundleno = 3 (0x3), region = 67 }
 0x1d5   :  { %250 = vsyncpa [#allocation3], 1 }
 0x1d6   :  { %252 = vsyncpa [#allocation3 + $0x1], 1 }

</bundles_post_ra>
